<compile_context>
chip_gen: v7x
topology: tpu7x:2x2x1
jax: 0.10.0
libtpu: 0.0.40
codegen_flags: <defaults>
</compile_context>

<pallas_src>
import functools

import jax
import jax.numpy as jnp
from jax.experimental import pallas as pl
from jax.experimental.pallas import tpu as pltpu


def _round_up(a, b):
    return ((a + b - 1) // b) * b


def _fused_mlp_kernel(*refs, num_layers):
    """One row-tile through every Linear+ReLU stage; activation stays on-chip."""
    x_ref = refs[0]
    w_refs = refs[1:1 + num_layers]
    o_ref = refs[1 + num_layers]

    act = x_ref[...]
    for w_ref in w_refs:  # static unroll: num_layers is a compile-time constant
        y = jnp.dot(act.astype(w_ref.dtype), w_ref[...],
                    preferred_element_type=jnp.float32)
        act = jnp.maximum(y, 0.0)  # ReLU; Dropout is identity in eval mode
    o_ref[...] = act.astype(o_ref.dtype)


def general_multilayer_forward(x, weights, *, tile_m=512,
                               compute_dtype=jnp.bfloat16, out_dtype=None):
    """Fused forward of GeneralMultiLayer('linear', ...), eval mode.

    x: (N, dim_in).  weights: list of (d_in_l, d_out_l) arrays (i.e. W.T
    relative to the PyTorch (d_out, d_in) layout), chained as in the module.
    """
    n, d_in = x.shape
    num_layers = len(weights)
    assert num_layers >= 1
    assert weights[0].shape[0] == d_in
    for a, b in zip(weights[:-1], weights[1:]):
        assert a.shape[1] == b.shape[0]
    d_out_final = weights[-1].shape[1]
    out_dtype = x.dtype if out_dtype is None else out_dtype

    itemsize = jnp.dtype(compute_dtype).itemsize
    out_itemsize = jnp.dtype(out_dtype).itemsize

    # --- Per-layer lane-dense padded widths (not one global d_max). ---------
    din_pads = [_round_up(w.shape[0], 128) for w in weights]
    dout_pads = [_round_up(w.shape[1], 128) for w in weights]
    d_in_pad = din_pads[0]
    d_out_pad = dout_pads[-1]
    max_pad = max(din_pads + dout_pads)

    # --- Per-generation VMEM budget. ----------------------------------------
    try:
        vmem_cap = int(pltpu.get_tpu_info().vmem_capacity_bytes)
    except Exception:
        vmem_cap = 64 << 20  # conservative fallback (v7x per-core VMEM)
    vmem_budget = int(vmem_cap * 0.75)

    # Resident weight slab (single-buffered thanks to Buffered(1)).
    w_slab_bytes = sum(di * do for di, do in zip(din_pads, dout_pads)) * itemsize

    def footprint(tm):
        io_bytes = 2 * tm * d_in_pad * itemsize + 2 * tm * d_out_pad * out_itemsize
        act_bytes = 2 * tm * max_pad * 4  # f32 dot result + cast temporary
        return w_slab_bytes + io_bytes + act_bytes

    # --- Row tile: multiple of 128, shrink to fit VMEM, floor at 128. -------
    n_pad128 = _round_up(n, 128)
    tm = min(_round_up(max(tile_m, 128), 128), n_pad128)
    while tm > 128 and footprint(tm) > vmem_budget:
        tm = max(128, _round_up(tm // 2, 128))

    if footprint(128) > vmem_budget:
        # TODO(synk): K-tiled weight streaming path for very large dim_inner.
        raise NotImplementedError(
            "Resident weight slab exceeds the VMEM budget; "
            "K-tiled streaming path not implemented.")

    # >=2 row tiles when possible so v7x's 2 TensorCores can both get work.
    if n_pad128 >= 256 and (n_pad128 // tm) < 2:
        tm = max(128, ((n_pad128 // 2) // 128) * 128)

    n_pad = _round_up(n, tm)

    # --- Zero-pad inputs/weights: padded rows/cols contribute exactly 0 and
    #     ReLU(0) == 0, so the fused chain matches the unpadded computation. --
    x_p = jnp.zeros((n_pad, d_in_pad), compute_dtype).at[:n, :d_in].set(
        x.astype(compute_dtype))
    w_ps = []
    for w, di_p, do_p in zip(weights, din_pads, dout_pads):
        di, do = w.shape
        w_ps.append(jnp.zeros((di_p, do_p), compute_dtype)
                    .at[:di, :do].set(w.astype(compute_dtype)))

    grid = (n_pad // tm,)
    kernel = functools.partial(_fused_mlp_kernel, num_layers=num_layers)
    vmem_limit = int(min(vmem_budget, max(32 << 20, int(1.5 * footprint(tm)))))

    def build(single_buffer_weights):
        if single_buffer_weights:
            w_specs = [pl.BlockSpec((di_p, do_p), lambda i: (0, 0),
                                    pipeline_mode=pl.Buffered(1))
                       for di_p, do_p in zip(din_pads, dout_pads)]
        else:
            w_specs = [pl.BlockSpec((di_p, do_p), lambda i: (0, 0))
                       for di_p, do_p in zip(din_pads, dout_pads)]
        return pl.pallas_call(
            kernel,
            out_shape=jax.ShapeDtypeStruct((n_pad, d_out_pad), out_dtype),
            grid_spec=pltpu.PrefetchScalarGridSpec(
                num_scalar_prefetch=0,
                grid=grid,
                in_specs=[pl.BlockSpec((tm, d_in_pad), lambda i: (i, 0))]
                         + w_specs,
                out_specs=pl.BlockSpec((tm, d_out_pad), lambda i: (i, 0)),
            ),
            compiler_params=pltpu.CompilerParams(
                dimension_semantics=("parallel",),
                vmem_limit_bytes=vmem_limit,
            ),
        )

    try:
        out_p = build(True)(x_p, *w_ps)
    except Exception:
        # Fallback: default (double-buffered) weight pipelining, in case the
        # installed Pallas version rejects Buffered(1) on a constant block.
        out_p = build(False)(x_p, *w_ps)

    return out_p[:n, :d_out_final].astype(out_dtype)


def init_general_multilayer_params(key, num_layers, dim_in, dim_out, dim_inner):
    """Deterministic params mimicking nn.Linear(bias=False) default init
    (uniform(-1/sqrt(fan_in), 1/sqrt(fan_in))).  Weights stored as (d_in, d_out)."""
    dim_inner = dim_in if dim_inner is None else dim_inner
    weights = []
    for i in range(num_layers):
        d_in = dim_in if i == 0 else dim_inner
        d_out = dim_out if i == num_layers - 1 else dim_inner
        key, sub = jax.random.split(key)
        bound = 1.0 / (d_in ** 0.5)
        # PyTorch weight is (d_out, d_in); create it that way then transpose.
        w_pt = jax.random.uniform(sub, (d_out, d_in), jnp.float32, -bound, bound)
        weights.append(w_pt.T)  # (d_in, d_out)
    return weights


def _reference_forward(x, weights):
    for w in weights:
        x = jnp.maximum(x @ w, 0.0)
    return x


if __name__ == "__main__":
    # Small shapes consistent with the module: batch of 8 node-feature rows,
    # dim_in=16 -> dim_inner=64 (hidden) -> dim_out=32, dropout (eval -> identity).
    num_layers = 3
    dim_in, dim_out, dim_inner = 16, 32, 64
    batch = 8

    key = jax.random.PRNGKey(0)
    key, xkey = jax.random.split(key)
    x = jax.random.normal(xkey, (batch, dim_in), jnp.float32)
    weights = init_general_multilayer_params(key, num_layers, dim_in, dim_out,
                                             dim_inner)

    ref = _reference_forward(x, weights)

    # Strict numerical check: f32 compute path.
    out_f32 = jax.block_until_ready(
        general_multilayer_forward(x, weights, compute_dtype=jnp.float32))
    assert out_f32.shape == (batch, dim_out)
    assert jnp.allclose(out_f32, ref, atol=1e-5, rtol=1e-5), "f32 mismatch vs reference"

    # Fast path: bf16 MXU inputs with f32 accumulation.
    out_bf16 = jax.block_until_ready(
        general_multilayer_forward(x, weights, compute_dtype=jnp.bfloat16))
    assert out_bf16.shape == (batch, dim_out)
    assert jnp.allclose(out_bf16, ref, atol=5e-2, rtol=5e-2), "bf16 mismatch vs reference"

    print("KERNEL_OK")
</pallas_src>

<mosaic_0001>
module attributes {stable_mosaic.version = 11 : i64} {
  func.func @_fused_mlp_kernel(%arg0: i32, %arg1: memref<128x128xf32, #tpu.memory_space<vmem>>, %arg2: memref<128x128xf32, #tpu.memory_space<vmem>>, %arg3: memref<128x128xf32, #tpu.memory_space<vmem>>, %arg4: memref<128x128xf32, #tpu.memory_space<vmem>>, %arg5: memref<128x128xf32, #tpu.memory_space<vmem>>) attributes {dimension_semantics = [#tpu.dimension_semantics<parallel>], iteration_bounds = array<i64: 1>, scalar_prefetch = 0 : i64, scratch_operands = 0 : i64, tpu.core_type = #tpu.core_type<tc>, window_params = [{transform_indices = @transform_0, window_bounds = array<i64: 128, 128>}, {pipeline_mode = #tpu.pipeline_mode<synchronous>, transform_indices = @transform_1, window_bounds = array<i64: 128, 128>}, {pipeline_mode = #tpu.pipeline_mode<synchronous>, transform_indices = @transform_2, window_bounds = array<i64: 128, 128>}, {pipeline_mode = #tpu.pipeline_mode<synchronous>, transform_indices = @transform_3, window_bounds = array<i64: 128, 128>}, {transform_indices = @transform_4, window_bounds = array<i64: 128, 128>}]} {
    %c0 = arith.constant 0 : index
    %c0_0 = arith.constant 0 : index
    %0 = vector.load %arg1[%c0, %c0_0] : memref<128x128xf32, #tpu.memory_space<vmem>>, vector<128x128xf32>
    %c0_1 = arith.constant 0 : index
    %c0_2 = arith.constant 0 : index
    %1 = vector.load %arg2[%c0_1, %c0_2] : memref<128x128xf32, #tpu.memory_space<vmem>>, vector<128x128xf32>
    %cst = arith.constant dense<0.000000e+00> : vector<128x128xf32>
    %2 = tpu.matmul %0, %1, %cst {dimension_numbers = #tpu.dot_dimension_numbers<[1], [0], [0], [1], [0, 0, 1, 1], [], []>} : vector<128x128xf32>, vector<128x128xf32>, vector<128x128xf32> -> vector<128x128xf32>
    %cst_3 = arith.constant 0.000000e+00 : f32
    %3 = vector.broadcast %cst_3 : f32 to vector<128x128xf32>
    %4 = arith.maximumf %2, %3 : vector<128x128xf32>
    %c0_4 = arith.constant 0 : index
    %c0_5 = arith.constant 0 : index
    %5 = vector.load %arg3[%c0_4, %c0_5] : memref<128x128xf32, #tpu.memory_space<vmem>>, vector<128x128xf32>
    %cst_6 = arith.constant dense<0.000000e+00> : vector<128x128xf32>
    %6 = tpu.matmul %4, %5, %cst_6 {dimension_numbers = #tpu.dot_dimension_numbers<[1], [0], [0], [1], [0, 0, 1, 1], [], []>} : vector<128x128xf32>, vector<128x128xf32>, vector<128x128xf32> -> vector<128x128xf32>
    %cst_7 = arith.constant 0.000000e+00 : f32
    %7 = vector.broadcast %cst_7 : f32 to vector<128x128xf32>
    %8 = arith.maximumf %6, %7 : vector<128x128xf32>
    %c0_8 = arith.constant 0 : index
    %c0_9 = arith.constant 0 : index
    %9 = vector.load %arg4[%c0_8, %c0_9] : memref<128x128xf32, #tpu.memory_space<vmem>>, vector<128x128xf32>
    %cst_10 = arith.constant dense<0.000000e+00> : vector<128x128xf32>
    %10 = tpu.matmul %8, %9, %cst_10 {dimension_numbers = #tpu.dot_dimension_numbers<[1], [0], [0], [1], [0, 0, 1, 1], [], []>} : vector<128x128xf32>, vector<128x128xf32>, vector<128x128xf32> -> vector<128x128xf32>
    %cst_11 = arith.constant 0.000000e+00 : f32
    %11 = vector.broadcast %cst_11 : f32 to vector<128x128xf32>
    %12 = arith.maximumf %10, %11 : vector<128x128xf32>
    %c0_12 = arith.constant 0 : index
    %c0_13 = arith.constant 0 : index
    %13 = vector.load %arg5[%c0_12, %c0_13] : memref<128x128xf32, #tpu.memory_space<vmem>>, vector<128x128xf32>
    tpu.vector_store %arg5[%c0_12, %c0_13], %12 {strides = array<i32>} : memref<128x128xf32, #tpu.memory_space<vmem>>, vector<128x128xf32>,
    return
  }
  func.func @transform_0(%arg0: i32) -> (i32, i32) {
    %c0_i32 = arith.constant 0 : i32
    %c0_i32_0 = arith.constant 0 : i32
    return %arg0, %c0_i32 : i32, i32
  }
  func.func @transform_1(%arg0: i32) -> (i32, i32) {
    %c0_i32 = arith.constant 0 : i32
    %c0_i32_0 = arith.constant 0 : i32
    %c0_i32_1 = arith.constant 0 : i32
    return %c0_i32, %c0_i32_0 : i32, i32
  }
  func.func @transform_2(%arg0: i32) -> (i32, i32) {
    %c0_i32 = arith.constant 0 : i32
    %c0_i32_0 = arith.constant 0 : i32
    %c0_i32_1 = arith.constant 0 : i32
    return %c0_i32, %c0_i32_0 : i32, i32
  }
  func.func @transform_3(%arg0: i32) -> (i32, i32) {
    %c0_i32 = arith.constant 0 : i32
    %c0_i32_0 = arith.constant 0 : i32
    %c0_i32_1 = arith.constant 0 : i32
    return %c0_i32, %c0_i32_0 : i32, i32
  }
  func.func @transform_4(%arg0: i32) -> (i32, i32) {
    %c0_i32 = arith.constant 0 : i32
    %c0_i32_0 = arith.constant 0 : i32
    return %arg0, %c0_i32 : i32, i32
  }
}

module attributes {stable_mosaic.version = 11 : i64} {
  func.func @_fused_mlp_kernel(%arg0: i32, %arg1: memref<128x128xf32, #tpu.memory_space<vmem>>, %arg2: memref<128x128xf32, #tpu.memory_space<vmem>>, %arg3: memref<128x128xf32, #tpu.memory_space<vmem>>, %arg4: memref<128x128xf32, #tpu.memory_space<vmem>>, %arg5: memref<128x128xf32, #tpu.memory_space<vmem>>) attributes {dimension_semantics = [#tpu.dimension_semantics<parallel>], iteration_bounds = array<i64: 1>, scalar_prefetch = 0 : i64, scratch_operands = 0 : i64, tpu.core_type = #tpu.core_type<tc>, window_params = [{transform_indices = @transform_0, window_bounds = array<i64: 128, 128>}, {pipeline_mode = #tpu.pipeline_mode<synchronous>, transform_indices = @transform_1, window_bounds = array<i64: 128, 128>}, {pipeline_mode = #tpu.pipeline_mode<synchronous>, transform_indices = @transform_2, window_bounds = array<i64: 128, 128>}, {pipeline_mode = #tpu.pipeline_mode<synchronous>, transform_indices = @transform_3, window_bounds = array<i64: 128, 128>}, {transform_indices = @transform_4, window_bounds = array<i64: 128, 128>}]} {
    %c0 = arith.constant 0 : index
    %c0_0 = arith.constant 0 : index
    %0 = vector.load %arg1[%c0, %c0_0] : memref<128x128xf32, #tpu.memory_space<vmem>>, vector<128x128xf32>
    %c0_1 = arith.constant 0 : index
    %c0_2 = arith.constant 0 : index
    %1 = vector.load %arg2[%c0_1, %c0_2] : memref<128x128xf32, #tpu.memory_space<vmem>>, vector<128x128xf32>
    %cst = arith.constant dense<0.000000e+00> : vector<128x128xf32>
    %2 = tpu.matmul %0, %1, %cst {dimension_numbers = #tpu.dot_dimension_numbers<[1], [0], [0], [1], [0, 0, 1, 1], [], []>} : vector<128x128xf32>, vector<128x128xf32>, vector<128x128xf32> -> vector<128x128xf32>
    %cst_3 = arith.constant 0.000000e+00 : f32
    %3 = vector.broadcast %cst_3 : f32 to vector<128x128xf32>
    %4 = arith.maximumf %2, %3 : vector<128x128xf32>
    %c0_4 = arith.constant 0 : index
    %c0_5 = arith.constant 0 : index
    %5 = vector.load %arg3[%c0_4, %c0_5] : memref<128x128xf32, #tpu.memory_space<vmem>>, vector<128x128xf32>
    %cst_6 = arith.constant dense<0.000000e+00> : vector<128x128xf32>
    %6 = tpu.matmul %4, %5, %cst_6 {dimension_numbers = #tpu.dot_dimension_numbers<[1], [0], [0], [1], [0, 0, 1, 1], [], []>} : vector<128x128xf32>, vector<128x128xf32>, vector<128x128xf32> -> vector<128x128xf32>
    %cst_7 = arith.constant 0.000000e+00 : f32
    %7 = vector.broadcast %cst_7 : f32 to vector<128x128xf32>
    %8 = arith.maximumf %6, %7 : vector<128x128xf32>
    %c0_8 = arith.constant 0 : index
    %c0_9 = arith.constant 0 : index
    %9 = vector.load %arg4[%c0_8, %c0_9] : memref<128x128xf32, #tpu.memory_space<vmem>>, vector<128x128xf32>
    %cst_10 = arith.constant dense<0.000000e+00> : vector<128x128xf32>
    %10 = tpu.matmul %8, %9, %cst_10 {dimension_numbers = #tpu.dot_dimension_numbers<[1], [0], [0], [1], [0, 0, 1, 1], [], []>} : vector<128x128xf32>, vector<128x128xf32>, vector<128x128xf32> -> vector<128x128xf32>
    %cst_11 = arith.constant 0.000000e+00 : f32
    %11 = vector.broadcast %cst_11 : f32 to vector<128x128xf32>
    %12 = arith.maximumf %10, %11 : vector<128x128xf32>
    %c0_12 = arith.constant 0 : index
    %c0_13 = arith.constant 0 : index
    %13 = vector.load %arg5[%c0_12, %c0_13] : memref<128x128xf32, #tpu.memory_space<vmem>>, vector<128x128xf32>
    tpu.vector_store %arg5[%c0_12, %c0_13], %12 {strides = array<i32>} : memref<128x128xf32, #tpu.memory_space<vmem>>, vector<128x128xf32>,
    return
  }
  func.func @transform_0(%arg0: i32) -> (i32, i32) {
    %c0_i32 = arith.constant 0 : i32
    %c0_i32_0 = arith.constant 0 : i32
    return %arg0, %c0_i32 : i32, i32
  }
  func.func @transform_1(%arg0: i32) -> (i32, i32) {
    %c0_i32 = arith.constant 0 : i32
    %c0_i32_0 = arith.constant 0 : i32
    %c0_i32_1 = arith.constant 0 : i32
    return %c0_i32, %c0_i32_0 : i32, i32
  }
  func.func @transform_2(%arg0: i32) -> (i32, i32) {
    %c0_i32 = arith.constant 0 : i32
    %c0_i32_0 = arith.constant 0 : i32
    %c0_i32_1 = arith.constant 0 : i32
    return %c0_i32, %c0_i32_0 : i32, i32
  }
  func.func @transform_3(%arg0: i32) -> (i32, i32) {
    %c0_i32 = arith.constant 0 : i32
    %c0_i32_0 = arith.constant 0 : i32
    %c0_i32_1 = arith.constant 0 : i32
    return %c0_i32, %c0_i32_0 : i32, i32
  }
  func.func @transform_4(%arg0: i32) -> (i32, i32) {
    %c0_i32 = arith.constant 0 : i32
    %c0_i32_0 = arith.constant 0 : i32
    return %arg0, %c0_i32 : i32, i32
  }
}

</mosaic_0001>

<bundles_post_ra>
// kernel: tpu_custom_call.1
= control target key start
LH: loop header
LB: loop body
LE: loop exit
PB: predicated region body
PF: predicated region fallthrough
CT: control target
= control target key end

     0   :  { %9 = vsyncpa [#allocation3], 0  ;;  %s1277_s0 = inlined_call_operand.hbm [shape: f32[128,128], index: 0, kind: input, shape index: {}]   ;;  %s1278_s1 = inlined_call_operand.hbm [shape: f32[128,128], index: 1, kind: input, shape index: {}]   ;;  %s1279_s2 = inlined_call_operand.hbm [shape: f32[128,128], index: 2, kind: input, shape index: {}]   ;;  %s1280_s3 = inlined_call_operand.hbm [shape: f32[128,128], index: 3, kind: input, shape index: {}]   ;;  %s1281_s4 = inlined_call_operand.hbm [shape: f32[128,128], index: 4, kind: output, shape index: {}]  }
   0x1   :  { %10 = vsyncpa [#allocation6], 0 }
   0x2   :  { %11 = vsyncpa [#allocation9], 0 }
   0x3   :  { %12 = vsyncpa [#allocation4], 0  ;;  %s1156_s15 = smov [#allocation5]   ;;  %s1157_s17 = smov [#allocation2]  }
   0x4   :  { %s30_s16 = sshll.u32 %s1156_s15, 4  ;;  %s18_s18 = sshll.u32 %s1157_s17, 4  ;;  %s31_s16 = int_to_ptr.vmem [resolvable:$true] %s30_s16  ;;  %s1188_s18 = int_to_ptr.vmem [resolvable:$true] %s18_s18 }
   0x5   :  { %s1038_s21 = scalar_lea.hbm %s1278_s1, 2048 }
   0x6   :  { %p1039_p0 = scmp.ne.s32.totalorder %s1278_s1, %s1038_s21  ;;  %p1042_p1 = scmp.lt.u32.totalorder %s1038_s21, %s1278_s1 }
   0x8   :  { %p1044_p2 = pnand %p1042_p1, %p1039_p0 }
   0xa   :  { %1047 = shalt.err (!%p1044_p2)
}
   0xb   :  { %s1048_s26 = scalar_lea.vmem %s31_s16, 2048  ;;  %p1053_p4 = scmp.lt.s32.totalorder %s31_s16, %s31_s16 }
   0xc   :  { %p1049_p3 = scmp.ne.s32.totalorder %s31_s16, %s1048_s26  ;;  %p1054_p5 = scmp.lt.s32.totalorder %s1048_s26, %s1048_s26 }
   0xe   :  { %p1055_p6 = por %p1054_p5, %p1053_p4 }
  0x10   :  { %p1056_p7 = pnand %p1055_p6, %p1049_p3 }
  0x12   :  { %1059 = shalt.err (!%p1056_p7)
}
  0x13   :  { %s1158_s27 = smov 128   ;;  %s1159_s28 = smov 8  }
  0x14   :  { %36 = dma.hbm_to_vmem [thread:$0]  %s1278_s1, 2048, %s31_s16, [#allocation6], %s1158_s27, %s1158_s27, %s1159_s28  }
  0x15   :  { %s1060_s7 = scalar_lea.hbm %s1277_s0, 2048 }
  0x16   :  { %p1061_p8 = scmp.ne.s32.totalorder %s1277_s0, %s1060_s7  ;;  %p1064_p9 = scmp.lt.u32.totalorder %s1060_s7, %s1277_s0 }
  0x18   :  { %p1066_p10 = pnand %p1064_p9, %p1061_p8 }
  0x1a   :  { %1069 = shalt.err (!%p1066_p10)
}
  0x1b   :  { %s1070_s12 = scalar_lea.vmem %s1188_s18, 2048  ;;  %p1075_p12 = scmp.lt.s32.totalorder %s1188_s18, %s1188_s18 }
  0x1c   :  { %p1071_p11 = scmp.ne.s32.totalorder %s1188_s18, %s1070_s12  ;;  %p1076_p13 = scmp.lt.s32.totalorder %s1070_s12, %s1070_s12 }
  0x1e   :  { %p1077_p0 = por %p1076_p13, %p1075_p12 }
  0x20   :  { %p1078_p1 = pnand %p1077_p0, %p1071_p11 }
  0x22   :  { %1081 = shalt.err (!%p1078_p1)
}
  0x23   :  { %24 = dma.hbm_to_vmem [thread:$0]  %s1277_s0, 2048, %s1188_s18, [#allocation3], %s1158_s27, %s1158_s27, %s1159_s28  }
  0x24   :  { %s1160_s14 = smov [#allocation7]   ;;  %s1161_s16 = smov [#allocation8]  }
  0x25   :  { %s42_s15 = sshll.u32 %s1160_s14, 4  ;;  %s54_s17 = sshll.u32 %s1161_s16, 4  ;;  %s43_s15 = int_to_ptr.vmem [resolvable:$true] %s42_s15  ;;  %s1225_s17 = int_to_ptr.vmem [resolvable:$true] %s54_s17 }
  0x26   :  { %s1082_s21 = scalar_lea.hbm %s1279_s2, 2048 }
  0x27   :  { %p1083_p2 = scmp.ne.s32.totalorder %s1279_s2, %s1082_s21  ;;  %p1086_p3 = scmp.lt.u32.totalorder %s1082_s21, %s1279_s2 }
  0x29   :  { %p1088_p4 = pnand %p1086_p3, %p1083_p2 }
  0x2b   :  { %1091 = shalt.err (!%p1088_p4)
}
  0x2c   :  { %s1092_s0 = scalar_lea.vmem %s43_s15, 2048  ;;  %p1097_p6 = scmp.lt.s32.totalorder %s43_s15, %s43_s15 }
  0x2d   :  { %p1093_p5 = scmp.ne.s32.totalorder %s43_s15, %s1092_s0  ;;  %p1098_p7 = scmp.lt.s32.totalorder %s1092_s0, %s1092_s0 }
  0x2f   :  { %p1099_p8 = por %p1098_p7, %p1097_p6 }
  0x31   :  { %p1100_p9 = pnand %p1099_p8, %p1093_p5 }
  0x33   :  { %1103 = shalt.err (!%p1100_p9)
}
  0x34   :  { %48 = dma.hbm_to_vmem [thread:$0]  %s1279_s2, 2048, %s43_s15, [#allocation6], %s1158_s27, %s1158_s27, %s1159_s28  }
  0x35   :  { %s1104_s5 = scalar_lea.hbm %s1280_s3, 2048 }
  0x36   :  { %p1105_p10 = scmp.ne.s32.totalorder %s1280_s3, %s1104_s5  ;;  %p1108_p11 = scmp.lt.u32.totalorder %s1104_s5, %s1280_s3 }
  0x38   :  { %p1110_p12 = pnand %p1108_p11, %p1105_p10 }
  0x3a   :  { %1113 = shalt.err (!%p1110_p12)
}
  0x3b   :  { %s1114_s10 = scalar_lea.vmem %s1225_s17, 2048  ;;  %p1119_p0 = scmp.lt.s32.totalorder %s1225_s17, %s1225_s17 }
  0x3c   :  { %p1115_p13 = scmp.ne.s32.totalorder %s1225_s17, %s1114_s10  ;;  %p1120_p1 = scmp.lt.s32.totalorder %s1114_s10, %s1114_s10 }
  0x3e   :  { %p1121_p2 = por %p1120_p1, %p1119_p0 }
  0x40   :  { %p1122_p3 = pnand %p1121_p2, %p1115_p13 }
  0x42   :  { %1125 = shalt.err (!%p1122_p3)
}
  0x43   :  { %60 = dma.hbm_to_vmem [thread:$0]  %s1280_s3, 2048, %s1225_s17, [#allocation9], %s1158_s27, %s1158_s27, %s1159_s28  }
  0x44   :  { %1148 = dma.done.wait [#allocation3], 2048  }
  0x45   :  { %1149 = vsyncadd [#allocation3], 4294965248 }
  0x46   :  { %1150 = dma.done.wait [#allocation6], 4096  }
  0x47   :  { %1151 = vsyncadd [#allocation6], 4294963200 }
  0x48   :  { %1152 = dma.done.wait [#allocation9], 2048  }
  0x49   :  { %1153 = vsyncadd [#allocation9], 4294965248  ;;  %v89_v0 = vld [vmem:[#allocation5] sm:$0xff]  ;;  %v90_v1 = vld [vmem:[#allocation5 + $0x8] sm:$0xff]  ;;  %s1162_s3 = smov [#allocation10]  }
  0x4a   :  { %v91_v2 = vld [vmem:[#allocation5 + $0x10] sm:$0xff]  ;;  %v919_v3 = vpack.c.bf16 %v90_v1, %v89_v0  ;;  %v92_v4 = vld [vmem:[#allocation5 + $0x18] sm:$0xff]  ;;  %v93_v6 = vld [vmem:[#allocation5 + $0x20] sm:$0xff]  ;;  %s641_s12 = sshll.u32 %s1162_s3, 4  ;;  %s642_s12 = int_to_ptr.vmem [resolvable:$true] %s641_s12 }
  0x4b   :  { %v923_v5 = vpack.c.bf16 %v92_v4, %v91_v2  ;;  %v94_v7 = vld [vmem:[#allocation5 + $0x28] sm:$0xff]  ;;  %v73_v9 = vld [vmem:[#allocation2] sm:$0xff]  ;;  %v95_v10 = vld [vmem:[#allocation5 + $0x30] sm:$0xff]  ;;  %s1126_s1 = scalar_lea.vmem %s642_s12, 2048  ;;  %p1131_p5 = scmp.lt.s32.totalorder %s642_s12, %s642_s12 }
  0x4c   :  { %920 = vmatprep.subr.bf16.mxu0 %v919_v3  ;;  %v927_v8 = vpack.c.bf16 %v94_v7, %v93_v6  ;;  %v96_v11 = vld [vmem:[#allocation5 + $0x38] sm:$0xff]  ;;  %783 = vmatprep.mubr.f32.mxu0 %v73_v9  ;;  %v97_v13 = vld [vmem:[#allocation5 + $0x40] sm:$0xff]  ;;  %v98_v14 = vld [vmem:[#allocation5 + $0x48] sm:$0xff]  ;;  %p1127_p4 = scmp.ne.s32.totalorder %s642_s12, %s1126_s1  ;;  %p1132_p6 = scmp.lt.s32.totalorder %s1126_s1, %s1126_s1 }
  0x4d   :  { %922 = vmatpush3.bf16.msra.mxu0 %v919_v3  ;;  %v931_v12 = vpack.c.bf16 %v96_v11, %v95_v10  ;;  %v266_v15 = vld [vmem:[#allocation7] sm:$0xff]  ;;  %v267_v16 = vld [vmem:[#allocation7 + $0x8] sm:$0xff]  ;;  %v268_v17 = vld [vmem:[#allocation7 + $0x10] sm:$0xff]  ;;  %v935_v21 = vpack.c.bf16 %v98_v14, %v97_v13 }
  0x4e   :  { %924 = vmatprep.subr.bf16.mxu0 %v923_v5  ;;  %v269_v18 = vld [vmem:[#allocation7 + $0x18] sm:$0xff]  ;;  %v951_v19 = vpack.c.bf16 %v267_v16, %v266_v15  ;;  %v270_v22 = vld [vmem:[#allocation7 + $0x20] sm:$0xff]  ;;  %v271_v23 = vld [vmem:[#allocation7 + $0x28] sm:$0xff]  ;;  %p1133_p7 = por %p1132_p6, %p1131_p5 }
  0x4f   :  { %v955_v20 = vpack.c.bf16 %v269_v18, %v268_v17  ;;  %v99_v24 = vld [vmem:[#allocation5 + $0x50] sm:$0xff]  ;;  %v100_v25 = vld [vmem:[#allocation5 + $0x58] sm:$0xff]  ;;  %v959_v26 = vpack.c.bf16 %v271_v23, %v270_v22  ;;  %v101_v30 = vld [vmem:[#allocation5 + $0x60] sm:$0xff] }
  0x50   :  { %952 = vmatprep.subr.bf16.mxu1 %v951_v19  ;;  %v939_v27 = vpack.c.bf16 %v100_v25, %v99_v24  ;;  %v272_v28 = vld [vmem:[#allocation7 + $0x30] sm:$0xff]  ;;  %v273_v29 = vld [vmem:[#allocation7 + $0x38] sm:$0xff]  ;;  %v102_v31 = vld [vmem:[#allocation5 + $0x68] sm:$0xff]  ;;  %p1134_p8 = pnand %p1133_p7, %p1127_p4 }
  0x51   :  { %926 = vmatpush3.bf16.msra.mxu0 %v923_v5  ;;  %954 = vmatpush3.bf16.msra.mxu1 %v951_v19  ;;  %v963_v32 = vpack.c.bf16 %v273_v29, %v272_v28  ;;  %v943_v33 = vpack.c.bf16 %v102_v31, %v101_v30  ;;  %v274_v34 = vld [vmem:[#allocation7 + $0x40] sm:$0xff]  ;;  %v275_v35 = vld [vmem:[#allocation7 + $0x48] sm:$0xff]  ;;  %v103_v36 = vld [vmem:[#allocation5 + $0x70] sm:$0xff] }
  0x52   :  { %928 = vmatprep.subr.bf16.mxu0 %v927_v8  ;;  %956 = vmatprep.subr.bf16.mxu1 %v955_v20  ;;  %v104_v37 = vld [vmem:[#allocation5 + $0x78] sm:$0xff]  ;;  %v967_v38 = vpack.c.bf16 %v275_v35, %v274_v34  ;;  %v276_v40 = vld [vmem:[#allocation7 + $0x50] sm:$0xff]  ;;  %v278_v43 = vld [vmem:[#allocation7 + $0x60] sm:$0xff] }
  0x53   :  { %v947_v39 = vpack.c.bf16 %v104_v37, %v103_v36  ;;  %v277_v41 = vld [vmem:[#allocation7 + $0x58] sm:$0xff]  ;;  %v279_v44 = vld [vmem:[#allocation7 + $0x68] sm:$0xff]  ;;  %v75_v47 = vld [vmem:[#allocation2 + $0x10] sm:$0xff] }
  0x54   :  { %v971_v42 = vpack.c.bf16 %v277_v41, %v276_v40  ;;  %v74_v45 = vld [vmem:[#allocation2 + $0x8] sm:$0xff]  ;;  %v975_v46 = vpack.c.bf16 %v279_v44, %v278_v43  ;;  %v76_v48 = vld [vmem:[#allocation2 + $0x18] sm:$0xff]  ;;  %v77_v49 = vld [vmem:[#allocation2 + $0x20] sm:$0xff] }
  0x55   :  { %930 = vmatpush3.bf16.msra.mxu0 %v927_v8  ;;  %958 = vmatpush3.bf16.msra.mxu1 %v955_v20  ;;  %v78_v50 = vld [vmem:[#allocation2 + $0x28] sm:$0xff]  ;;  %v79_v51 = vld [vmem:[#allocation2 + $0x30] sm:$0xff]  ;;  %v80_v52 = vld [vmem:[#allocation2 + $0x38] sm:$0xff] }
  0x56   :  { %932 = vmatprep.subr.bf16.mxu0 %v931_v12  ;;  %960 = vmatprep.subr.bf16.mxu1 %v959_v26  ;;  %v81_v53 = vld [vmem:[#allocation2 + $0x40] sm:$0xff]  ;;  %v82_v54 = vld [vmem:[#allocation2 + $0x48] sm:$0xff]  ;;  %v83_v55 = vld [vmem:[#allocation2 + $0x50] sm:$0xff] }
  0x57   :  { %v84_v56 = vld [vmem:[#allocation2 + $0x58] sm:$0xff]  ;;  %v85_v57 = vld [vmem:[#allocation2 + $0x60] sm:$0xff]  ;;  %v86_v58 = vld [vmem:[#allocation2 + $0x68] sm:$0xff] }
  0x58   :  { %v87_v59 = vld [vmem:[#allocation2 + $0x70] sm:$0xff]  ;;  %v88_v60 = vld [vmem:[#allocation2 + $0x78] sm:$0xff]  ;;  %v443_v0 = vld [vmem:[#allocation8] sm:$0xff] }
  0x59   :  { %934 = vmatpush3.bf16.msra.mxu0 %v931_v12  ;;  %962 = vmatpush3.bf16.msra.mxu1 %v959_v26  ;;  %v280_v61 = vld [vmem:[#allocation7 + $0x70] sm:$0xff]  ;;  %v281_v62 = vld [vmem:[#allocation7 + $0x78] sm:$0xff]  ;;  %v444_v1 = vld [vmem:[#allocation8 + $0x8] sm:$0xff] }
  0x5a   :  { %936 = vmatprep.subr.bf16.mxu0 %v935_v21  ;;  %964 = vmatprep.subr.bf16.mxu1 %v963_v32  ;;  %v979_v63 = vpack.c.bf16 %v281_v62, %v280_v61  ;;  %v445_v2 = vld [vmem:[#allocation8 + $0x10] sm:$0xff]  ;;  %v983_v3 = vpack.c.bf16 %v444_v1, %v443_v0  ;;  %v446_v4 = vld [vmem:[#allocation8 + $0x18] sm:$0xff]  ;;  %v447_v6 = vld [vmem:[#allocation8 + $0x20] sm:$0xff] }
  0x5b   :  { %v987_v5 = vpack.c.bf16 %v446_v4, %v445_v2  ;;  %v448_v7 = vld [vmem:[#allocation8 + $0x28] sm:$0xff]  ;;  %v449_v9 = vld [vmem:[#allocation8 + $0x30] sm:$0xff]  ;;  %v450_v10 = vld [vmem:[#allocation8 + $0x38] sm:$0xff] }
  0x5c   :  { %v991_v8 = vpack.c.bf16 %v448_v7, %v447_v6  ;;  %v995_v11 = vpack.c.bf16 %v450_v10, %v449_v9  ;;  %v451_v12 = vld [vmem:[#allocation8 + $0x40] sm:$0xff]  ;;  %v452_v13 = vld [vmem:[#allocation8 + $0x48] sm:$0xff]  ;;  %v453_v15 = vld [vmem:[#allocation8 + $0x50] sm:$0xff] }
  0x5d   :  { %938 = vmatpush3.bf16.msra.mxu0 %v935_v21  ;;  %966 = vmatpush3.bf16.msra.mxu1 %v963_v32  ;;  %v999_v14 = vpack.c.bf16 %v452_v13, %v451_v12  ;;  %v454_v16 = vld [vmem:[#allocation8 + $0x58] sm:$0xff]  ;;  %v455_v18 = vld [vmem:[#allocation8 + $0x60] sm:$0xff]  ;;  %v456_v19 = vld [vmem:[#allocation8 + $0x68] sm:$0xff] }
  0x5e   :  { %940 = vmatprep.subr.bf16.mxu0 %v939_v27  ;;  %968 = vmatprep.subr.bf16.mxu1 %v967_v38  ;;  %v1003_v17 = vpack.c.bf16 %v454_v16, %v453_v15  ;;  %v1007_v20 = vpack.c.bf16 %v456_v19, %v455_v18 }
  0x61   :  { %942 = vmatpush3.bf16.msra.mxu0 %v939_v27  ;;  %970 = vmatpush3.bf16.msra.mxu1 %v967_v38 }
  0x62   :  { %944 = vmatprep.subr.bf16.mxu0 %v943_v33  ;;  %972 = vmatprep.subr.bf16.mxu1 %v971_v42 }
  0x65   :  { %946 = vmatpush3.bf16.msra.mxu0 %v943_v33  ;;  %974 = vmatpush3.bf16.msra.mxu1 %v971_v42 }
  0x66   :  { %948 = vmatprep.subr.bf16.mxu0 %v947_v39  ;;  %976 = vmatprep.subr.bf16.mxu1 %v975_v46 }
  0x69   :  { %950 = vmatpush3.bf16.msra.mxu0 %v947_v39  ;;  %978 = vmatpush3.bf16.msra.mxu1 %v975_v46 }
  0x6a   :  { %980 = vmatprep.subr.bf16.mxu1 %v979_v63  ;;  %984 = vmatprep.subr.bf16.mxu0 %v983_v3 }
  0x6c   :  { %784 = vmatmul.mubr.f32.vlgmr.msra.gmra.mrb[0].mxu0 %v74_v45 }
  0x6d   :  { %786 = vmatprep.mubr.f32.mxu0 %v75_v47  ;;  %982 = vmatpush3.bf16.msra.mxu1 %v979_v63 }
  0x6e   :  { %1015 = vmatprep.subr.bf16.mxu1 %v983_v3  ;;  %986 = vmatpush3.bf16.msra.mxu0 %v983_v3 }
  0x6f   :  { %988 = vmatprep.subr.bf16.mxu0 %v987_v5 }
  0x70   :  { %787 = vmatmul.mubr.f32.gmra.mrb[2].mxu0 %v76_v48 }
  0x71   :  { %789 = vmatprep.mubr.f32.mxu0 %v77_v49 }
  0x72   :  { %990 = vmatpush3.bf16.msra.mxu0 %v987_v5 }
  0x73   :  { %992 = vmatprep.subr.bf16.mxu0 %v991_v8 }
  0x74   :  { %790 = vmatmul.mubr.f32.gmra.mrb[4].mxu0 %v78_v50 }
  0x75   :  { %792 = vmatprep.mubr.f32.mxu0 %v79_v51 }
  0x76   :  { %994 = vmatpush3.bf16.msra.mxu0 %v991_v8 }
  0x77   :  { %996 = vmatprep.subr.bf16.mxu0 %v995_v11 }
  0x78   :  { %793 = vmatmul.mubr.f32.gmra.mrb[6].mxu0 %v80_v52 }
  0x79   :  { %795 = vmatprep.mubr.f32.mxu0 %v81_v53  ;;  %v457_v53 = vld [vmem:[#allocation8 + $0x70] sm:$0xff] }
  0x7a   :  { %998 = vmatpush3.bf16.msra.mxu0 %v995_v11 }
  0x7b   :  { %1000 = vmatprep.subr.bf16.mxu0 %v999_v14 }
  0x7c   :  { %796 = vmatmul.mubr.f32.gmra.mrb[8].mxu0 %v82_v54  ;;  %v458_v54 = vld [vmem:[#allocation8 + $0x78] sm:$0xff] }
  0x7d   :  { %798 = vmatprep.mubr.f32.mxu0 %v83_v55  ;;  %v1011_v55 = vpack.c.bf16 %v458_v54, %v457_v53 }
  0x7e   :  { %1002 = vmatpush3.bf16.msra.mxu0 %v999_v14 }
  0x7f   :  { %1004 = vmatprep.subr.bf16.mxu0 %v1003_v17 }
  0x80   :  { %799 = vmatmul.mubr.f32.gmra.mrb[10].mxu0 %v84_v56 }
  0x81   :  { %801 = vmatprep.mubr.f32.mxu0 %v85_v57 }
  0x82   :  { %1006 = vmatpush3.bf16.msra.mxu0 %v1003_v17 }
  0x83   :  { %1008 = vmatprep.subr.bf16.mxu0 %v1007_v20 }
  0x84   :  { %802 = vmatmul.mubr.f32.gmra.mrb[12].mxu0 %v86_v58 }
  0x85   :  { %804 = vmatprep.mubr.f32.mxu0 %v87_v59 }
  0x86   :  { %1010 = vmatpush3.bf16.msra.mxu0 %v1007_v20 }
  0x87   :  { %1012 = vmatprep.subr.bf16.mxu0 %v1011_v55 }
  0x88   :  { %805 = vmatmul.mubr.f32.gmra.mrb[14].mxu0 %v88_v60 }
  0x8a   :  { %1014 = vmatpush3.bf16.msra.mxu0 %v1011_v55 }
 0x13f   :  { %v785_v21 = vpop.f32.mrb[0].mxu0 }
 0x140   :  { %v171_v22 = vpop.f32.mrb[1].mxu0  ;;  %v251_v24 = vmax.f32 %v785_v21, 0.0 }
 0x141   :  { %v250_v23 = vmax.f32 %v171_v22, 0.0 }
 0x143   :  { %v788_v25 = vpop.f32.mrb[2].mxu0  ;;  %839 = vmatprep.mubr.f32.mxu1 %v250_v23 }
 0x144   :  { %v181_v26 = vpop.f32.mrb[3].mxu0  ;;  %840 = vmatmul.mubr.f32.vlgmr.msra.gmra.mrb[0].mxu1 %v251_v24  ;;  %v253_v28 = vmax.f32 %v788_v25, 0.0 }
 0x145   :  { %v252_v27 = vmax.f32 %v181_v26, 0.0  ;;  %1023 = vmatpush3.bf16.msra.mxu1 %v983_v3 }
 0x146   :  { %1016 = vmatprep.subr.bf16.mxu1 %v987_v5 }
 0x147   :  { %v791_v29 = vpop.f32.mrb[4].mxu0  ;;  %842 = vmatprep.mubr.f32.mxu1 %v252_v27 }
 0x148   :  { %v191_v30 = vpop.f32.mrb[5].mxu0  ;;  %843 = vmatmul.mubr.f32.gmra.mrb[2].mxu1 %v253_v28  ;;  %v255_v32 = vmax.f32 %v791_v29, 0.0 }
 0x149   :  { %v254_v31 = vmax.f32 %v191_v30, 0.0  ;;  %1024 = vmatpush3.bf16.msra.mxu1 %v987_v5 }
 0x14a   :  { %1017 = vmatprep.subr.bf16.mxu1 %v991_v8 }
 0x14b   :  { %v794_v33 = vpop.f32.mrb[6].mxu0  ;;  %845 = vmatprep.mubr.f32.mxu1 %v254_v31 }
 0x14c   :  { %v201_v34 = vpop.f32.mrb[7].mxu0  ;;  %846 = vmatmul.mubr.f32.gmra.mrb[4].mxu1 %v255_v32  ;;  %v257_v36 = vmax.f32 %v794_v33, 0.0 }
 0x14d   :  { %v256_v35 = vmax.f32 %v201_v34, 0.0  ;;  %1025 = vmatpush3.bf16.msra.mxu1 %v991_v8 }
 0x14e   :  { %1018 = vmatprep.subr.bf16.mxu1 %v995_v11 }
 0x14f   :  { %v797_v37 = vpop.f32.mrb[8].mxu0  ;;  %848 = vmatprep.mubr.f32.mxu1 %v256_v35 }
 0x150   :  { %v211_v38 = vpop.f32.mrb[9].mxu0  ;;  %849 = vmatmul.mubr.f32.gmra.mrb[6].mxu1 %v257_v36  ;;  %v259_v40 = vmax.f32 %v797_v37, 0.0 }
 0x151   :  { %v258_v39 = vmax.f32 %v211_v38, 0.0  ;;  %1026 = vmatpush3.bf16.msra.mxu1 %v995_v11 }
 0x152   :  { %1019 = vmatprep.subr.bf16.mxu1 %v999_v14 }
 0x153   :  { %v800_v41 = vpop.f32.mrb[10].mxu0  ;;  %851 = vmatprep.mubr.f32.mxu1 %v258_v39 }
 0x154   :  { %v221_v42 = vpop.f32.mrb[11].mxu0  ;;  %852 = vmatmul.mubr.f32.gmra.mrb[8].mxu1 %v259_v40  ;;  %v261_v44 = vmax.f32 %v800_v41, 0.0 }
 0x155   :  { %v260_v43 = vmax.f32 %v221_v42, 0.0  ;;  %1027 = vmatpush3.bf16.msra.mxu1 %v999_v14 }
 0x156   :  { %1020 = vmatprep.subr.bf16.mxu1 %v1003_v17 }
 0x157   :  { %v803_v45 = vpop.f32.mrb[12].mxu0  ;;  %854 = vmatprep.mubr.f32.mxu1 %v260_v43 }
 0x158   :  { %v231_v46 = vpop.f32.mrb[13].mxu0  ;;  %855 = vmatmul.mubr.f32.gmra.mrb[10].mxu1 %v261_v44  ;;  %v263_v48 = vmax.f32 %v803_v45, 0.0 }
 0x159   :  { %v262_v47 = vmax.f32 %v231_v46, 0.0  ;;  %1028 = vmatpush3.bf16.msra.mxu1 %v1003_v17 }
 0x15a   :  { %1021 = vmatprep.subr.bf16.mxu1 %v1007_v20 }
 0x15b   :  { %v806_v49 = vpop.f32.mrb[14].mxu0  ;;  %857 = vmatprep.mubr.f32.mxu1 %v262_v47 }
 0x15c   :  { %v241_v50 = vpop.f32.mrb[15].mxu0  ;;  %858 = vmatmul.mubr.f32.gmra.mrb[12].mxu1 %v263_v48  ;;  %v265_v52 = vmax.f32 %v806_v49, 0.0 }
 0x15d   :  { %v264_v51 = vmax.f32 %v241_v50, 0.0  ;;  %1029 = vmatpush3.bf16.msra.mxu1 %v1007_v20 }
 0x15e   :  { %1022 = vmatprep.subr.bf16.mxu1 %v1011_v55 }
 0x15f   :  { %860 = vmatprep.mubr.f32.mxu1 %v264_v51 }
 0x160   :  { %861 = vmatmul.mubr.f32.gmra.mrb[14].mxu1 %v265_v52 }
 0x161   :  { %1030 = vmatpush3.bf16.msra.mxu1 %v1011_v55 }
 0x217   :  { %v841_v56 = vpop.f32.mrb[0].mxu1 }
 0x218   :  { %v348_v57 = vpop.f32.mrb[1].mxu1  ;;  %v428_v59 = vmax.f32 %v841_v56, 0.0 }
 0x219   :  { %v427_v58 = vmax.f32 %v348_v57, 0.0 }
 0x21b   :  { %v844_v60 = vpop.f32.mrb[2].mxu1  ;;  %895 = vmatprep.mubr.f32.mxu0 %v427_v58 }
 0x21c   :  { %v358_v61 = vpop.f32.mrb[3].mxu1  ;;  %896 = vmatmul.mubr.f32.vlgmr.msra.gmra.mrb[16].mxu0 %v428_v59  ;;  %v430_v63 = vmax.f32 %v844_v60, 0.0 }
 0x21d   :  { %v429_v62 = vmax.f32 %v358_v61, 0.0 }
 0x21f   :  { %v847_v0 = vpop.f32.mrb[4].mxu1  ;;  %898 = vmatprep.mubr.f32.mxu0 %v429_v62 }
 0x220   :  { %v368_v1 = vpop.f32.mrb[5].mxu1  ;;  %899 = vmatmul.mubr.f32.gmra.mrb[18].mxu0 %v430_v63  ;;  %v432_v3 = vmax.f32 %v847_v0, 0.0 }
 0x221   :  { %v431_v2 = vmax.f32 %v368_v1, 0.0 }
 0x223   :  { %v850_v4 = vpop.f32.mrb[6].mxu1  ;;  %901 = vmatprep.mubr.f32.mxu0 %v431_v2 }
 0x224   :  { %v378_v5 = vpop.f32.mrb[7].mxu1  ;;  %902 = vmatmul.mubr.f32.gmra.mrb[20].mxu0 %v432_v3  ;;  %v434_v7 = vmax.f32 %v850_v4, 0.0 }
 0x225   :  { %v433_v6 = vmax.f32 %v378_v5, 0.0 }
 0x227   :  { %v853_v8 = vpop.f32.mrb[8].mxu1  ;;  %904 = vmatprep.mubr.f32.mxu0 %v433_v6 }
 0x228   :  { %v388_v9 = vpop.f32.mrb[9].mxu1  ;;  %905 = vmatmul.mubr.f32.gmra.mrb[22].mxu0 %v434_v7  ;;  %v436_v11 = vmax.f32 %v853_v8, 0.0 }
 0x229   :  { %v435_v10 = vmax.f32 %v388_v9, 0.0 }
 0x22b   :  { %v856_v12 = vpop.f32.mrb[10].mxu1  ;;  %907 = vmatprep.mubr.f32.mxu1 %v435_v10 }
 0x22c   :  { %v398_v13 = vpop.f32.mrb[11].mxu1  ;;  %908 = vmatmul.mubr.f32.vlgmr.msra.gmra.mrb[16].mxu1 %v436_v11  ;;  %v438_v15 = vmax.f32 %v856_v12, 0.0 }
 0x22d   :  { %v437_v14 = vmax.f32 %v398_v13, 0.0 }
 0x22f   :  { %v859_v16 = vpop.f32.mrb[12].mxu1  ;;  %910 = vmatprep.mubr.f32.mxu1 %v437_v14 }
 0x230   :  { %v408_v17 = vpop.f32.mrb[13].mxu1  ;;  %911 = vmatmul.mubr.f32.gmra.mrb[18].mxu1 %v438_v15  ;;  %v440_v19 = vmax.f32 %v859_v16, 0.0 }
 0x231   :  { %v439_v18 = vmax.f32 %v408_v17, 0.0 }
 0x233   :  { %v862_v20 = vpop.f32.mrb[14].mxu1  ;;  %913 = vmatprep.mubr.f32.mxu1 %v439_v18 }
 0x234   :  { %v418_v21 = vpop.f32.mrb[15].mxu1  ;;  %914 = vmatmul.mubr.f32.gmra.mrb[20].mxu1 %v440_v19  ;;  %v442_v23 = vmax.f32 %v862_v20, 0.0 }
 0x235   :  { %v441_v22 = vmax.f32 %v418_v21, 0.0 }
 0x237   :  { %916 = vmatprep.mubr.f32.mxu1 %v441_v22 }
 0x238   :  { %917 = vmatmul.mubr.f32.gmra.mrb[22].mxu1 %v442_v23 }
 0x2ef   :  { %v897_v24 = vpop.f32.mrb[16].mxu0 }
 0x2f0   :  { %v605_v25 = vmax.f32 %v897_v24, 0.0  ;;  %v525_v26 = vpop.f32.mrb[17].mxu0 }
 0x2f1   :  { %v604_v27 = vmax.f32 %v525_v26, 0.0 }
 0x2f2   :  { %621 = vst [vmem:[#allocation10 + $0x8] sm:$0xff] %v605_v25 }
 0x2f3   :  { %620 = vst [vmem:[#allocation10] sm:$0xff] %v604_v27  ;;  %v900_v28 = vpop.f32.mrb[18].mxu0 }
 0x2f4   :  { %v607_v29 = vmax.f32 %v900_v28, 0.0  ;;  %v535_v30 = vpop.f32.mrb[19].mxu0 }
 0x2f5   :  { %v606_v31 = vmax.f32 %v535_v30, 0.0 }
 0x2f6   :  { %623 = vst [vmem:[#allocation10 + $0x18] sm:$0xff] %v607_v29 }
 0x2f7   :  { %622 = vst [vmem:[#allocation10 + $0x10] sm:$0xff] %v606_v31  ;;  %v903_v32 = vpop.f32.mrb[20].mxu0 }
 0x2f8   :  { %v609_v33 = vmax.f32 %v903_v32, 0.0  ;;  %v545_v34 = vpop.f32.mrb[21].mxu0 }
 0x2f9   :  { %v608_v35 = vmax.f32 %v545_v34, 0.0 }
 0x2fa   :  { %625 = vst [vmem:[#allocation10 + $0x28] sm:$0xff] %v609_v33 }
 0x2fb   :  { %624 = vst [vmem:[#allocation10 + $0x20] sm:$0xff] %v608_v35  ;;  %v906_v36 = vpop.f32.mrb[22].mxu0 }
 0x2fc   :  { %v611_v37 = vmax.f32 %v906_v36, 0.0  ;;  %v555_v38 = vpop.f32.mrb[23].mxu0 }
 0x2fd   :  { %v610_v39 = vmax.f32 %v555_v38, 0.0 }
 0x2fe   :  { %627 = vst [vmem:[#allocation10 + $0x38] sm:$0xff] %v611_v37 }
 0x2ff   :  { %626 = vst [vmem:[#allocation10 + $0x30] sm:$0xff] %v610_v39  ;;  %v909_v40 = vpop.f32.mrb[16].mxu1 }
 0x300   :  { %v613_v41 = vmax.f32 %v909_v40, 0.0  ;;  %v565_v42 = vpop.f32.mrb[17].mxu1 }
 0x301   :  { %v612_v43 = vmax.f32 %v565_v42, 0.0 }
 0x302   :  { %629 = vst [vmem:[#allocation10 + $0x48] sm:$0xff] %v613_v41 }
 0x303   :  { %628 = vst [vmem:[#allocation10 + $0x40] sm:$0xff] %v612_v43  ;;  %v912_v44 = vpop.f32.mrb[18].mxu1 }
 0x304   :  { %v615_v45 = vmax.f32 %v912_v44, 0.0  ;;  %v575_v46 = vpop.f32.mrb[19].mxu1 }
 0x305   :  { %v614_v47 = vmax.f32 %v575_v46, 0.0 }
 0x306   :  { %631 = vst [vmem:[#allocation10 + $0x58] sm:$0xff] %v615_v45 }
 0x307   :  { %630 = vst [vmem:[#allocation10 + $0x50] sm:$0xff] %v614_v47  ;;  %v915_v48 = vpop.f32.mrb[20].mxu1 }
 0x308   :  { %v617_v49 = vmax.f32 %v915_v48, 0.0  ;;  %v585_v50 = vpop.f32.mrb[21].mxu1 }
 0x309   :  { %v616_v51 = vmax.f32 %v585_v50, 0.0 }
 0x30a   :  { %633 = vst [vmem:[#allocation10 + $0x68] sm:$0xff] %v617_v49 }
 0x30b   :  { %632 = vst [vmem:[#allocation10 + $0x60] sm:$0xff] %v616_v51  ;;  %v918_v52 = vpop.f32.mrb[22].mxu1 }
 0x30c   :  { %v619_v53 = vmax.f32 %v918_v52, 0.0  ;;  %v595_v54 = vpop.f32.mrb[23].mxu1 }
 0x30d   :  { %v618_v55 = vmax.f32 %v595_v54, 0.0 }
 0x30e   :  { %635 = vst [vmem:[#allocation10 + $0x78] sm:$0xff] %v619_v53 }
 0x30f   :  { %634 = vst [vmem:[#allocation10 + $0x70] sm:$0xff] %v618_v55 }
 0x310   :  { %1137 = shalt.err (!%p1134_p8)
}
 0x311   :  { %s1138_s15 = scalar_lea.hbm %s1281_s4, 2048 }
 0x312   :  { %p1139_p9 = scmp.ne.s32.totalorder %s1281_s4, %s1138_s15  ;;  %p1142_p10 = scmp.lt.u32.totalorder %s1138_s15, %s1281_s4 }
 0x314   :  { %p1144_p11 = pnand %p1142_p10, %p1139_p9 }
 0x316   :  { %1147 = shalt.err (!%p1144_p11)
}
 0x317   :  { %647 = dma.vmem_to_hbm [thread:$0]  %s642_s12, 2048, %s1281_s4, [#allocation4], %s1158_s27, %s1158_s27, %s1159_s28  }
 0x318   :  { %1154 = dma.done.wait [#allocation4], 2048  }
 0x319   :  { %1155 = vsyncadd [#allocation4], 4294965248 }
 0x31a   :  { %651 = vsyncpa [#allocation3], 1 }
 0x31b   :  { %652 = vsyncpa [#allocation6], 1 }
 0x31c   :  { %653 = vsyncpa [#allocation9], 1 }
 0x31d   :  { %654 = vsyncpa [#allocation4], 1 }

// kernel: tpu_custom_call.1
= control target key start
LH: loop header
LB: loop body
LE: loop exit
PB: predicated region body
PF: predicated region fallthrough
CT: control target
= control target key end

     0   :  { %9 = vsyncpa [#allocation3], 0  ;;  %s1277_s0 = inlined_call_operand.hbm [shape: f32[128,128], index: 0, kind: input, shape index: {}]   ;;  %s1278_s1 = inlined_call_operand.hbm [shape: f32[128,128], index: 1, kind: input, shape index: {}]   ;;  %s1279_s2 = inlined_call_operand.hbm [shape: f32[128,128], index: 2, kind: input, shape index: {}]   ;;  %s1280_s3 = inlined_call_operand.hbm [shape: f32[128,128], index: 3, kind: input, shape index: {}]   ;;  %s1281_s4 = inlined_call_operand.hbm [shape: f32[128,128], index: 4, kind: output, shape index: {}]  }
   0x1   :  { %10 = vsyncpa [#allocation6], 0 }
   0x2   :  { %11 = vsyncpa [#allocation9], 0 }
   0x3   :  { %12 = vsyncpa [#allocation4], 0  ;;  %s1156_s15 = smov [#allocation5]   ;;  %s1157_s17 = smov [#allocation2]  }
   0x4   :  { %s30_s16 = sshll.u32 %s1156_s15, 4  ;;  %s18_s18 = sshll.u32 %s1157_s17, 4  ;;  %s31_s16 = int_to_ptr.vmem [resolvable:$true] %s30_s16  ;;  %s1188_s18 = int_to_ptr.vmem [resolvable:$true] %s18_s18 }
   0x5   :  { %s1038_s21 = scalar_lea.hbm %s1278_s1, 2048 }
   0x6   :  { %p1039_p0 = scmp.ne.s32.totalorder %s1278_s1, %s1038_s21  ;;  %p1042_p1 = scmp.lt.u32.totalorder %s1038_s21, %s1278_s1 }
   0x8   :  { %p1044_p2 = pnand %p1042_p1, %p1039_p0 }
   0xa   :  { %1047 = shalt.err (!%p1044_p2)
}
   0xb   :  { %s1048_s26 = scalar_lea.vmem %s31_s16, 2048  ;;  %p1053_p4 = scmp.lt.s32.totalorder %s31_s16, %s31_s16 }
   0xc   :  { %p1049_p3 = scmp.ne.s32.totalorder %s31_s16, %s1048_s26  ;;  %p1054_p5 = scmp.lt.s32.totalorder %s1048_s26, %s1048_s26 }
   0xe   :  { %p1055_p6 = por %p1054_p5, %p1053_p4 }
  0x10   :  { %p1056_p7 = pnand %p1055_p6, %p1049_p3 }
  0x12   :  { %1059 = shalt.err (!%p1056_p7)
}
  0x13   :  { %s1158_s27 = smov 128   ;;  %s1159_s28 = smov 8  }
  0x14   :  { %36 = dma.hbm_to_vmem [thread:$0]  %s1278_s1, 2048, %s31_s16, [#allocation6], %s1158_s27, %s1158_s27, %s1159_s28  }
  0x15   :  { %s1060_s7 = scalar_lea.hbm %s1277_s0, 2048 }
  0x16   :  { %p1061_p8 = scmp.ne.s32.totalorder %s1277_s0, %s1060_s7  ;;  %p1064_p9 = scmp.lt.u32.totalorder %s1060_s7, %s1277_s0 }
  0x18   :  { %p1066_p10 = pnand %p1064_p9, %p1061_p8 }
  0x1a   :  { %1069 = shalt.err (!%p1066_p10)
}
  0x1b   :  { %s1070_s12 = scalar_lea.vmem %s1188_s18, 2048  ;;  %p1075_p12 = scmp.lt.s32.totalorder %s1188_s18, %s1188_s18 }
  0x1c   :  { %p1071_p11 = scmp.ne.s32.totalorder %s1188_s18, %s1070_s12  ;;  %p1076_p13 = scmp.lt.s32.totalorder %s1070_s12, %s1070_s12 }
  0x1e   :  { %p1077_p0 = por %p1076_p13, %p1075_p12 }
  0x20   :  { %p1078_p1 = pnand %p1077_p0, %p1071_p11 }
  0x22   :  { %1081 = shalt.err (!%p1078_p1)
}
  0x23   :  { %24 = dma.hbm_to_vmem [thread:$0]  %s1277_s0, 2048, %s1188_s18, [#allocation3], %s1158_s27, %s1158_s27, %s1159_s28  }
  0x24   :  { %s1160_s14 = smov [#allocation7]   ;;  %s1161_s16 = smov [#allocation8]  }
  0x25   :  { %s42_s15 = sshll.u32 %s1160_s14, 4  ;;  %s54_s17 = sshll.u32 %s1161_s16, 4  ;;  %s43_s15 = int_to_ptr.vmem [resolvable:$true] %s42_s15  ;;  %s1225_s17 = int_to_ptr.vmem [resolvable:$true] %s54_s17 }
  0x26   :  { %s1082_s21 = scalar_lea.hbm %s1279_s2, 2048 }
  0x27   :  { %p1083_p2 = scmp.ne.s32.totalorder %s1279_s2, %s1082_s21  ;;  %p1086_p3 = scmp.lt.u32.totalorder %s1082_s21, %s1279_s2 }
  0x29   :  { %p1088_p4 = pnand %p1086_p3, %p1083_p2 }
  0x2b   :  { %1091 = shalt.err (!%p1088_p4)
}
  0x2c   :  { %s1092_s0 = scalar_lea.vmem %s43_s15, 2048  ;;  %p1097_p6 = scmp.lt.s32.totalorder %s43_s15, %s43_s15 }
  0x2d   :  { %p1093_p5 = scmp.ne.s32.totalorder %s43_s15, %s1092_s0  ;;  %p1098_p7 = scmp.lt.s32.totalorder %s1092_s0, %s1092_s0 }
  0x2f   :  { %p1099_p8 = por %p1098_p7, %p1097_p6 }
  0x31   :  { %p1100_p9 = pnand %p1099_p8, %p1093_p5 }
  0x33   :  { %1103 = shalt.err (!%p1100_p9)
}
  0x34   :  { %48 = dma.hbm_to_vmem [thread:$0]  %s1279_s2, 2048, %s43_s15, [#allocation6], %s1158_s27, %s1158_s27, %s1159_s28  }
  0x35   :  { %s1104_s5 = scalar_lea.hbm %s1280_s3, 2048 }
  0x36   :  { %p1105_p10 = scmp.ne.s32.totalorder %s1280_s3, %s1104_s5  ;;  %p1108_p11 = scmp.lt.u32.totalorder %s1104_s5, %s1280_s3 }
  0x38   :  { %p1110_p12 = pnand %p1108_p11, %p1105_p10 }
  0x3a   :  { %1113 = shalt.err (!%p1110_p12)
}
  0x3b   :  { %s1114_s10 = scalar_lea.vmem %s1225_s17, 2048  ;;  %p1119_p0 = scmp.lt.s32.totalorder %s1225_s17, %s1225_s17 }
  0x3c   :  { %p1115_p13 = scmp.ne.s32.totalorder %s1225_s17, %s1114_s10  ;;  %p1120_p1 = scmp.lt.s32.totalorder %s1114_s10, %s1114_s10 }
  0x3e   :  { %p1121_p2 = por %p1120_p1, %p1119_p0 }
  0x40   :  { %p1122_p3 = pnand %p1121_p2, %p1115_p13 }
  0x42   :  { %1125 = shalt.err (!%p1122_p3)
}
  0x43   :  { %60 = dma.hbm_to_vmem [thread:$0]  %s1280_s3, 2048, %s1225_s17, [#allocation9], %s1158_s27, %s1158_s27, %s1159_s28  }
  0x44   :  { %1148 = dma.done.wait [#allocation3], 2048  }
  0x45   :  { %1149 = vsyncadd [#allocation3], 4294965248 }
  0x46   :  { %1150 = dma.done.wait [#allocation6], 4096  }
  0x47   :  { %1151 = vsyncadd [#allocation6], 4294963200 }
  0x48   :  { %1152 = dma.done.wait [#allocation9], 2048  }
  0x49   :  { %1153 = vsyncadd [#allocation9], 4294965248  ;;  %v89_v0 = vld [vmem:[#allocation5] sm:$0xff]  ;;  %v90_v1 = vld [vmem:[#allocation5 + $0x8] sm:$0xff]  ;;  %s1162_s3 = smov [#allocation10]  }
  0x4a   :  { %v91_v2 = vld [vmem:[#allocation5 + $0x10] sm:$0xff]  ;;  %v919_v3 = vpack.c.bf16 %v90_v1, %v89_v0  ;;  %v92_v4 = vld [vmem:[#allocation5 + $0x18] sm:$0xff]  ;;  %v93_v6 = vld [vmem:[#allocation5 + $0x20] sm:$0xff]  ;;  %s641_s12 = sshll.u32 %s1162_s3, 4  ;;  %s642_s12 = int_to_ptr.vmem [resolvable:$true] %s641_s12 }
  0x4b   :  { %v923_v5 = vpack.c.bf16 %v92_v4, %v91_v2  ;;  %v94_v7 = vld [vmem:[#allocation5 + $0x28] sm:$0xff]  ;;  %v73_v9 = vld [vmem:[#allocation2] sm:$0xff]  ;;  %v95_v10 = vld [vmem:[#allocation5 + $0x30] sm:$0xff]  ;;  %s1126_s1 = scalar_lea.vmem %s642_s12, 2048  ;;  %p1131_p5 = scmp.lt.s32.totalorder %s642_s12, %s642_s12 }
  0x4c   :  { %920 = vmatprep.subr.bf16.mxu0 %v919_v3  ;;  %v927_v8 = vpack.c.bf16 %v94_v7, %v93_v6  ;;  %v96_v11 = vld [vmem:[#allocation5 + $0x38] sm:$0xff]  ;;  %783 = vmatprep.mubr.f32.mxu0 %v73_v9  ;;  %v97_v13 = vld [vmem:[#allocation5 + $0x40] sm:$0xff]  ;;  %v98_v14 = vld [vmem:[#allocation5 + $0x48] sm:$0xff]  ;;  %p1127_p4 = scmp.ne.s32.totalorder %s642_s12, %s1126_s1  ;;  %p1132_p6 = scmp.lt.s32.totalorder %s1126_s1, %s1126_s1 }
  0x4d   :  { %922 = vmatpush3.bf16.msra.mxu0 %v919_v3  ;;  %v931_v12 = vpack.c.bf16 %v96_v11, %v95_v10  ;;  %v266_v15 = vld [vmem:[#allocation7] sm:$0xff]  ;;  %v267_v16 = vld [vmem:[#allocation7 + $0x8] sm:$0xff]  ;;  %v268_v17 = vld [vmem:[#allocation7 + $0x10] sm:$0xff]  ;;  %v935_v21 = vpack.c.bf16 %v98_v14, %v97_v13 }
  0x4e   :  { %924 = vmatprep.subr.bf16.mxu0 %v923_v5  ;;  %v269_v18 = vld [vmem:[#allocation7 + $0x18] sm:$0xff]  ;;  %v951_v19 = vpack.c.bf16 %v267_v16, %v266_v15  ;;  %v270_v22 = vld [vmem:[#allocation7 + $0x20] sm:$0xff]  ;;  %v271_v23 = vld [vmem:[#allocation7 + $0x28] sm:$0xff]  ;;  %p1133_p7 = por %p1132_p6, %p1131_p5 }
  0x4f   :  { %v955_v20 = vpack.c.bf16 %v269_v18, %v268_v17  ;;  %v99_v24 = vld [vmem:[#allocation5 + $0x50] sm:$0xff]  ;;  %v100_v25 = vld [vmem:[#allocation5 + $0x58] sm:$0xff]  ;;  %v959_v26 = vpack.c.bf16 %v271_v23, %v270_v22  ;;  %v101_v30 = vld [vmem:[#allocation5 + $0x60] sm:$0xff] }
  0x50   :  { %952 = vmatprep.subr.bf16.mxu1 %v951_v19  ;;  %v939_v27 = vpack.c.bf16 %v100_v25, %v99_v24  ;;  %v272_v28 = vld [vmem:[#allocation7 + $0x30] sm:$0xff]  ;;  %v273_v29 = vld [vmem:[#allocation7 + $0x38] sm:$0xff]  ;;  %v102_v31 = vld [vmem:[#allocation5 + $0x68] sm:$0xff]  ;;  %p1134_p8 = pnand %p1133_p7, %p1127_p4 }
  0x51   :  { %926 = vmatpush3.bf16.msra.mxu0 %v923_v5  ;;  %954 = vmatpush3.bf16.msra.mxu1 %v951_v19  ;;  %v963_v32 = vpack.c.bf16 %v273_v29, %v272_v28  ;;  %v943_v33 = vpack.c.bf16 %v102_v31, %v101_v30  ;;  %v274_v34 = vld [vmem:[#allocation7 + $0x40] sm:$0xff]  ;;  %v275_v35 = vld [vmem:[#allocation7 + $0x48] sm:$0xff]  ;;  %v103_v36 = vld [vmem:[#allocation5 + $0x70] sm:$0xff] }
  0x52   :  { %928 = vmatprep.subr.bf16.mxu0 %v927_v8  ;;  %956 = vmatprep.subr.bf16.mxu1 %v955_v20  ;;  %v104_v37 = vld [vmem:[#allocation5 + $0x78] sm:$0xff]  ;;  %v967_v38 = vpack.c.bf16 %v275_v35, %v274_v34  ;;  %v276_v40 = vld [vmem:[#allocation7 + $0x50] sm:$0xff]  ;;  %v278_v43 = vld [vmem:[#allocation7 + $0x60] sm:$0xff] }
  0x53   :  { %v947_v39 = vpack.c.bf16 %v104_v37, %v103_v36  ;;  %v277_v41 = vld [vmem:[#allocation7 + $0x58] sm:$0xff]  ;;  %v279_v44 = vld [vmem:[#allocation7 + $0x68] sm:$0xff]  ;;  %v75_v47 = vld [vmem:[#allocation2 + $0x10] sm:$0xff] }
  0x54   :  { %v971_v42 = vpack.c.bf16 %v277_v41, %v276_v40  ;;  %v74_v45 = vld [vmem:[#allocation2 + $0x8] sm:$0xff]  ;;  %v975_v46 = vpack.c.bf16 %v279_v44, %v278_v43  ;;  %v76_v48 = vld [vmem:[#allocation2 + $0x18] sm:$0xff]  ;;  %v77_v49 = vld [vmem:[#allocation2 + $0x20] sm:$0xff] }
  0x55   :  { %930 = vmatpush3.bf16.msra.mxu0 %v927_v8  ;;  %958 = vmatpush3.bf16.msra.mxu1 %v955_v20  ;;  %v78_v50 = vld [vmem:[#allocation2 + $0x28] sm:$0xff]  ;;  %v79_v51 = vld [vmem:[#allocation2 + $0x30] sm:$0xff]  ;;  %v80_v52 = vld [vmem:[#allocation2 + $0x38] sm:$0xff] }
  0x56   :  { %932 = vmatprep.subr.bf16.mxu0 %v931_v12  ;;  %960 = vmatprep.subr.bf16.mxu1 %v959_v26  ;;  %v81_v53 = vld [vmem:[#allocation2 + $0x40] sm:$0xff]  ;;  %v82_v54 = vld [vmem:[#allocation2 + $0x48] sm:$0xff]  ;;  %v83_v55 = vld [vmem:[#allocation2 + $0x50] sm:$0xff] }
  0x57   :  { %v84_v56 = vld [vmem:[#allocation2 + $0x58] sm:$0xff]  ;;  %v85_v57 = vld [vmem:[#allocation2 + $0x60] sm:$0xff]  ;;  %v86_v58 = vld [vmem:[#allocation2 + $0x68] sm:$0xff] }
  0x58   :  { %v87_v59 = vld [vmem:[#allocation2 + $0x70] sm:$0xff]  ;;  %v88_v60 = vld [vmem:[#allocation2 + $0x78] sm:$0xff]  ;;  %v443_v0 = vld [vmem:[#allocation8] sm:$0xff] }
  0x59   :  { %934 = vmatpush3.bf16.msra.mxu0 %v931_v12  ;;  %962 = vmatpush3.bf16.msra.mxu1 %v959_v26  ;;  %v280_v61 = vld [vmem:[#allocation7 + $0x70] sm:$0xff]  ;;  %v281_v62 = vld [vmem:[#allocation7 + $0x78] sm:$0xff]  ;;  %v444_v1 = vld [vmem:[#allocation8 + $0x8] sm:$0xff] }
  0x5a   :  { %936 = vmatprep.subr.bf16.mxu0 %v935_v21  ;;  %964 = vmatprep.subr.bf16.mxu1 %v963_v32  ;;  %v979_v63 = vpack.c.bf16 %v281_v62, %v280_v61  ;;  %v445_v2 = vld [vmem:[#allocation8 + $0x10] sm:$0xff]  ;;  %v983_v3 = vpack.c.bf16 %v444_v1, %v443_v0  ;;  %v446_v4 = vld [vmem:[#allocation8 + $0x18] sm:$0xff]  ;;  %v447_v6 = vld [vmem:[#allocation8 + $0x20] sm:$0xff] }
  0x5b   :  { %v987_v5 = vpack.c.bf16 %v446_v4, %v445_v2  ;;  %v448_v7 = vld [vmem:[#allocation8 + $0x28] sm:$0xff]  ;;  %v449_v9 = vld [vmem:[#allocation8 + $0x30] sm:$0xff]  ;;  %v450_v10 = vld [vmem:[#allocation8 + $0x38] sm:$0xff] }
  0x5c   :  { %v991_v8 = vpack.c.bf16 %v448_v7, %v447_v6  ;;  %v995_v11 = vpack.c.bf16 %v450_v10, %v449_v9  ;;  %v451_v12 = vld [vmem:[#allocation8 + $0x40] sm:$0xff]  ;;  %v452_v13 = vld [vmem:[#allocation8 + $0x48] sm:$0xff]  ;;  %v453_v15 = vld [vmem:[#allocation8 + $0x50] sm:$0xff] }
  0x5d   :  { %938 = vmatpush3.bf16.msra.mxu0 %v935_v21  ;;  %966 = vmatpush3.bf16.msra.mxu1 %v963_v32  ;;  %v999_v14 = vpack.c.bf16 %v452_v13, %v451_v12  ;;  %v454_v16 = vld [vmem:[#allocation8 + $0x58] sm:$0xff]  ;;  %v455_v18 = vld [vmem:[#allocation8 + $0x60] sm:$0xff]  ;;  %v456_v19 = vld [vmem:[#allocation8 + $0x68] sm:$0xff] }
  0x5e   :  { %940 = vmatprep.subr.bf16.mxu0 %v939_v27  ;;  %968 = vmatprep.subr.bf16.mxu1 %v967_v38  ;;  %v1003_v17 = vpack.c.bf16 %v454_v16, %v453_v15  ;;  %v1007_v20 = vpack.c.bf16 %v456_v19, %v455_v18 }
  0x61   :  { %942 = vmatpush3.bf16.msra.mxu0 %v939_v27  ;;  %970 = vmatpush3.bf16.msra.mxu1 %v967_v38 }
  0x62   :  { %944 = vmatprep.subr.bf16.mxu0 %v943_v33  ;;  %972 = vmatprep.subr.bf16.mxu1 %v971_v42 }
  0x65   :  { %946 = vmatpush3.bf16.msra.mxu0 %v943_v33  ;;  %974 = vmatpush3.bf16.msra.mxu1 %v971_v42 }
  0x66   :  { %948 = vmatprep.subr.bf16.mxu0 %v947_v39  ;;  %976 = vmatprep.subr.bf16.mxu1 %v975_v46 }
  0x69   :  { %950 = vmatpush3.bf16.msra.mxu0 %v947_v39  ;;  %978 = vmatpush3.bf16.msra.mxu1 %v975_v46 }
  0x6a   :  { %980 = vmatprep.subr.bf16.mxu1 %v979_v63  ;;  %984 = vmatprep.subr.bf16.mxu0 %v983_v3 }
  0x6c   :  { %784 = vmatmul.mubr.f32.vlgmr.msra.gmra.mrb[0].mxu0 %v74_v45 }
  0x6d   :  { %786 = vmatprep.mubr.f32.mxu0 %v75_v47  ;;  %982 = vmatpush3.bf16.msra.mxu1 %v979_v63 }
  0x6e   :  { %1015 = vmatprep.subr.bf16.mxu1 %v983_v3  ;;  %986 = vmatpush3.bf16.msra.mxu0 %v983_v3 }
  0x6f   :  { %988 = vmatprep.subr.bf16.mxu0 %v987_v5 }
  0x70   :  { %787 = vmatmul.mubr.f32.gmra.mrb[2].mxu0 %v76_v48 }
  0x71   :  { %789 = vmatprep.mubr.f32.mxu0 %v77_v49 }
  0x72   :  { %990 = vmatpush3.bf16.msra.mxu0 %v987_v5 }
  0x73   :  { %992 = vmatprep.subr.bf16.mxu0 %v991_v8 }
  0x74   :  { %790 = vmatmul.mubr.f32.gmra.mrb[4].mxu0 %v78_v50 }
  0x75   :  { %792 = vmatprep.mubr.f32.mxu0 %v79_v51 }
  0x76   :  { %994 = vmatpush3.bf16.msra.mxu0 %v991_v8 }
  0x77   :  { %996 = vmatprep.subr.bf16.mxu0 %v995_v11 }
  0x78   :  { %793 = vmatmul.mubr.f32.gmra.mrb[6].mxu0 %v80_v52 }
  0x79   :  { %795 = vmatprep.mubr.f32.mxu0 %v81_v53  ;;  %v457_v53 = vld [vmem:[#allocation8 + $0x70] sm:$0xff] }
  0x7a   :  { %998 = vmatpush3.bf16.msra.mxu0 %v995_v11 }
  0x7b   :  { %1000 = vmatprep.subr.bf16.mxu0 %v999_v14 }
  0x7c   :  { %796 = vmatmul.mubr.f32.gmra.mrb[8].mxu0 %v82_v54  ;;  %v458_v54 = vld [vmem:[#allocation8 + $0x78] sm:$0xff] }
  0x7d   :  { %798 = vmatprep.mubr.f32.mxu0 %v83_v55  ;;  %v1011_v55 = vpack.c.bf16 %v458_v54, %v457_v53 }
  0x7e   :  { %1002 = vmatpush3.bf16.msra.mxu0 %v999_v14 }
  0x7f   :  { %1004 = vmatprep.subr.bf16.mxu0 %v1003_v17 }
  0x80   :  { %799 = vmatmul.mubr.f32.gmra.mrb[10].mxu0 %v84_v56 }
  0x81   :  { %801 = vmatprep.mubr.f32.mxu0 %v85_v57 }
  0x82   :  { %1006 = vmatpush3.bf16.msra.mxu0 %v1003_v17 }
  0x83   :  { %1008 = vmatprep.subr.bf16.mxu0 %v1007_v20 }
  0x84   :  { %802 = vmatmul.mubr.f32.gmra.mrb[12].mxu0 %v86_v58 }
  0x85   :  { %804 = vmatprep.mubr.f32.mxu0 %v87_v59 }
  0x86   :  { %1010 = vmatpush3.bf16.msra.mxu0 %v1007_v20 }
  0x87   :  { %1012 = vmatprep.subr.bf16.mxu0 %v1011_v55 }
  0x88   :  { %805 = vmatmul.mubr.f32.gmra.mrb[14].mxu0 %v88_v60 }
  0x8a   :  { %1014 = vmatpush3.bf16.msra.mxu0 %v1011_v55 }
 0x13f   :  { %v785_v21 = vpop.f32.mrb[0].mxu0 }
 0x140   :  { %v171_v22 = vpop.f32.mrb[1].mxu0  ;;  %v251_v24 = vmax.f32 %v785_v21, 0.0 }
 0x141   :  { %v250_v23 = vmax.f32 %v171_v22, 0.0 }
 0x143   :  { %v788_v25 = vpop.f32.mrb[2].mxu0  ;;  %839 = vmatprep.mubr.f32.mxu1 %v250_v23 }
 0x144   :  { %v181_v26 = vpop.f32.mrb[3].mxu0  ;;  %840 = vmatmul.mubr.f32.vlgmr.msra.gmra.mrb[0].mxu1 %v251_v24  ;;  %v253_v28 = vmax.f32 %v788_v25, 0.0 }
 0x145   :  { %v252_v27 = vmax.f32 %v181_v26, 0.0  ;;  %1023 = vmatpush3.bf16.msra.mxu1 %v983_v3 }
 0x146   :  { %1016 = vmatprep.subr.bf16.mxu1 %v987_v5 }
 0x147   :  { %v791_v29 = vpop.f32.mrb[4].mxu0  ;;  %842 = vmatprep.mubr.f32.mxu1 %v252_v27 }
 0x148   :  { %v191_v30 = vpop.f32.mrb[5].mxu0  ;;  %843 = vmatmul.mubr.f32.gmra.mrb[2].mxu1 %v253_v28  ;;  %v255_v32 = vmax.f32 %v791_v29, 0.0 }
 0x149   :  { %v254_v31 = vmax.f32 %v191_v30, 0.0  ;;  %1024 = vmatpush3.bf16.msra.mxu1 %v987_v5 }
 0x14a   :  { %1017 = vmatprep.subr.bf16.mxu1 %v991_v8 }
 0x14b   :  { %v794_v33 = vpop.f32.mrb[6].mxu0  ;;  %845 = vmatprep.mubr.f32.mxu1 %v254_v31 }
 0x14c   :  { %v201_v34 = vpop.f32.mrb[7].mxu0  ;;  %846 = vmatmul.mubr.f32.gmra.mrb[4].mxu1 %v255_v32  ;;  %v257_v36 = vmax.f32 %v794_v33, 0.0 }
 0x14d   :  { %v256_v35 = vmax.f32 %v201_v34, 0.0  ;;  %1025 = vmatpush3.bf16.msra.mxu1 %v991_v8 }
 0x14e   :  { %1018 = vmatprep.subr.bf16.mxu1 %v995_v11 }
 0x14f   :  { %v797_v37 = vpop.f32.mrb[8].mxu0  ;;  %848 = vmatprep.mubr.f32.mxu1 %v256_v35 }
 0x150   :  { %v211_v38 = vpop.f32.mrb[9].mxu0  ;;  %849 = vmatmul.mubr.f32.gmra.mrb[6].mxu1 %v257_v36  ;;  %v259_v40 = vmax.f32 %v797_v37, 0.0 }
 0x151   :  { %v258_v39 = vmax.f32 %v211_v38, 0.0  ;;  %1026 = vmatpush3.bf16.msra.mxu1 %v995_v11 }
 0x152   :  { %1019 = vmatprep.subr.bf16.mxu1 %v999_v14 }
 0x153   :  { %v800_v41 = vpop.f32.mrb[10].mxu0  ;;  %851 = vmatprep.mubr.f32.mxu1 %v258_v39 }
 0x154   :  { %v221_v42 = vpop.f32.mrb[11].mxu0  ;;  %852 = vmatmul.mubr.f32.gmra.mrb[8].mxu1 %v259_v40  ;;  %v261_v44 = vmax.f32 %v800_v41, 0.0 }
 0x155   :  { %v260_v43 = vmax.f32 %v221_v42, 0.0  ;;  %1027 = vmatpush3.bf16.msra.mxu1 %v999_v14 }
 0x156   :  { %1020 = vmatprep.subr.bf16.mxu1 %v1003_v17 }
 0x157   :  { %v803_v45 = vpop.f32.mrb[12].mxu0  ;;  %854 = vmatprep.mubr.f32.mxu1 %v260_v43 }
 0x158   :  { %v231_v46 = vpop.f32.mrb[13].mxu0  ;;  %855 = vmatmul.mubr.f32.gmra.mrb[10].mxu1 %v261_v44  ;;  %v263_v48 = vmax.f32 %v803_v45, 0.0 }
 0x159   :  { %v262_v47 = vmax.f32 %v231_v46, 0.0  ;;  %1028 = vmatpush3.bf16.msra.mxu1 %v1003_v17 }
 0x15a   :  { %1021 = vmatprep.subr.bf16.mxu1 %v1007_v20 }
 0x15b   :  { %v806_v49 = vpop.f32.mrb[14].mxu0  ;;  %857 = vmatprep.mubr.f32.mxu1 %v262_v47 }
 0x15c   :  { %v241_v50 = vpop.f32.mrb[15].mxu0  ;;  %858 = vmatmul.mubr.f32.gmra.mrb[12].mxu1 %v263_v48  ;;  %v265_v52 = vmax.f32 %v806_v49, 0.0 }
 0x15d   :  { %v264_v51 = vmax.f32 %v241_v50, 0.0  ;;  %1029 = vmatpush3.bf16.msra.mxu1 %v1007_v20 }
 0x15e   :  { %1022 = vmatprep.subr.bf16.mxu1 %v1011_v55 }
 0x15f   :  { %860 = vmatprep.mubr.f32.mxu1 %v264_v51 }
 0x160   :  { %861 = vmatmul.mubr.f32.gmra.mrb[14].mxu1 %v265_v52 }
 0x161   :  { %1030 = vmatpush3.bf16.msra.mxu1 %v1011_v55 }
 0x217   :  { %v841_v56 = vpop.f32.mrb[0].mxu1 }
 0x218   :  { %v348_v57 = vpop.f32.mrb[1].mxu1  ;;  %v428_v59 = vmax.f32 %v841_v56, 0.0 }
 0x219   :  { %v427_v58 = vmax.f32 %v348_v57, 0.0 }
 0x21b   :  { %v844_v60 = vpop.f32.mrb[2].mxu1  ;;  %895 = vmatprep.mubr.f32.mxu0 %v427_v58 }
 0x21c   :  { %v358_v61 = vpop.f32.mrb[3].mxu1  ;;  %896 = vmatmul.mubr.f32.vlgmr.msra.gmra.mrb[16].mxu0 %v428_v59  ;;  %v430_v63 = vmax.f32 %v844_v60, 0.0 }
 0x21d   :  { %v429_v62 = vmax.f32 %v358_v61, 0.0 }
 0x21f   :  { %v847_v0 = vpop.f32.mrb[4].mxu1  ;;  %898 = vmatprep.mubr.f32.mxu0 %v429_v62 }
 0x220   :  { %v368_v1 = vpop.f32.mrb[5].mxu1  ;;  %899 = vmatmul.mubr.f32.gmra.mrb[18].mxu0 %v430_v63  ;;  %v432_v3 = vmax.f32 %v847_v0, 0.0 }
 0x221   :  { %v431_v2 = vmax.f32 %v368_v1, 0.0 }
 0x223   :  { %v850_v4 = vpop.f32.mrb[6].mxu1  ;;  %901 = vmatprep.mubr.f32.mxu0 %v431_v2 }
 0x224   :  { %v378_v5 = vpop.f32.mrb[7].mxu1  ;;  %902 = vmatmul.mubr.f32.gmra.mrb[20].mxu0 %v432_v3  ;;  %v434_v7 = vmax.f32 %v850_v4, 0.0 }
 0x225   :  { %v433_v6 = vmax.f32 %v378_v5, 0.0 }
 0x227   :  { %v853_v8 = vpop.f32.mrb[8].mxu1  ;;  %904 = vmatprep.mubr.f32.mxu0 %v433_v6 }
 0x228   :  { %v388_v9 = vpop.f32.mrb[9].mxu1  ;;  %905 = vmatmul.mubr.f32.gmra.mrb[22].mxu0 %v434_v7  ;;  %v436_v11 = vmax.f32 %v853_v8, 0.0 }
 0x229   :  { %v435_v10 = vmax.f32 %v388_v9, 0.0 }
 0x22b   :  { %v856_v12 = vpop.f32.mrb[10].mxu1  ;;  %907 = vmatprep.mubr.f32.mxu1 %v435_v10 }
 0x22c   :  { %v398_v13 = vpop.f32.mrb[11].mxu1  ;;  %908 = vmatmul.mubr.f32.vlgmr.msra.gmra.mrb[16].mxu1 %v436_v11  ;;  %v438_v15 = vmax.f32 %v856_v12, 0.0 }
 0x22d   :  { %v437_v14 = vmax.f32 %v398_v13, 0.0 }
 0x22f   :  { %v859_v16 = vpop.f32.mrb[12].mxu1  ;;  %910 = vmatprep.mubr.f32.mxu1 %v437_v14 }
 0x230   :  { %v408_v17 = vpop.f32.mrb[13].mxu1  ;;  %911 = vmatmul.mubr.f32.gmra.mrb[18].mxu1 %v438_v15  ;;  %v440_v19 = vmax.f32 %v859_v16, 0.0 }
 0x231   :  { %v439_v18 = vmax.f32 %v408_v17, 0.0 }
 0x233   :  { %v862_v20 = vpop.f32.mrb[14].mxu1  ;;  %913 = vmatprep.mubr.f32.mxu1 %v439_v18 }
 0x234   :  { %v418_v21 = vpop.f32.mrb[15].mxu1  ;;  %914 = vmatmul.mubr.f32.gmra.mrb[20].mxu1 %v440_v19  ;;  %v442_v23 = vmax.f32 %v862_v20, 0.0 }
 0x235   :  { %v441_v22 = vmax.f32 %v418_v21, 0.0 }
 0x237   :  { %916 = vmatprep.mubr.f32.mxu1 %v441_v22 }
 0x238   :  { %917 = vmatmul.mubr.f32.gmra.mrb[22].mxu1 %v442_v23 }
 0x2ef   :  { %v897_v24 = vpop.f32.mrb[16].mxu0 }
 0x2f0   :  { %v605_v25 = vmax.f32 %v897_v24, 0.0  ;;  %v525_v26 = vpop.f32.mrb[17].mxu0 }
 0x2f1   :  { %v604_v27 = vmax.f32 %v525_v26, 0.0 }
 0x2f2   :  { %621 = vst [vmem:[#allocation10 + $0x8] sm:$0xff] %v605_v25 }
 0x2f3   :  { %620 = vst [vmem:[#allocation10] sm:$0xff] %v604_v27  ;;  %v900_v28 = vpop.f32.mrb[18].mxu0 }
 0x2f4   :  { %v607_v29 = vmax.f32 %v900_v28, 0.0  ;;  %v535_v30 = vpop.f32.mrb[19].mxu0 }
 0x2f5   :  { %v606_v31 = vmax.f32 %v535_v30, 0.0 }
 0x2f6   :  { %623 = vst [vmem:[#allocation10 + $0x18] sm:$0xff] %v607_v29 }
 0x2f7   :  { %622 = vst [vmem:[#allocation10 + $0x10] sm:$0xff] %v606_v31  ;;  %v903_v32 = vpop.f32.mrb[20].mxu0 }
 0x2f8   :  { %v609_v33 = vmax.f32 %v903_v32, 0.0  ;;  %v545_v34 = vpop.f32.mrb[21].mxu0 }
 0x2f9   :  { %v608_v35 = vmax.f32 %v545_v34, 0.0 }
 0x2fa   :  { %625 = vst [vmem:[#allocation10 + $0x28] sm:$0xff] %v609_v33 }
 0x2fb   :  { %624 = vst [vmem:[#allocation10 + $0x20] sm:$0xff] %v608_v35  ;;  %v906_v36 = vpop.f32.mrb[22].mxu0 }
 0x2fc   :  { %v611_v37 = vmax.f32 %v906_v36, 0.0  ;;  %v555_v38 = vpop.f32.mrb[23].mxu0 }
 0x2fd   :  { %v610_v39 = vmax.f32 %v555_v38, 0.0 }
 0x2fe   :  { %627 = vst [vmem:[#allocation10 + $0x38] sm:$0xff] %v611_v37 }
 0x2ff   :  { %626 = vst [vmem:[#allocation10 + $0x30] sm:$0xff] %v610_v39  ;;  %v909_v40 = vpop.f32.mrb[16].mxu1 }
 0x300   :  { %v613_v41 = vmax.f32 %v909_v40, 0.0  ;;  %v565_v42 = vpop.f32.mrb[17].mxu1 }
 0x301   :  { %v612_v43 = vmax.f32 %v565_v42, 0.0 }
 0x302   :  { %629 = vst [vmem:[#allocation10 + $0x48] sm:$0xff] %v613_v41 }
 0x303   :  { %628 = vst [vmem:[#allocation10 + $0x40] sm:$0xff] %v612_v43  ;;  %v912_v44 = vpop.f32.mrb[18].mxu1 }
 0x304   :  { %v615_v45 = vmax.f32 %v912_v44, 0.0  ;;  %v575_v46 = vpop.f32.mrb[19].mxu1 }
 0x305   :  { %v614_v47 = vmax.f32 %v575_v46, 0.0 }
 0x306   :  { %631 = vst [vmem:[#allocation10 + $0x58] sm:$0xff] %v615_v45 }
 0x307   :  { %630 = vst [vmem:[#allocation10 + $0x50] sm:$0xff] %v614_v47  ;;  %v915_v48 = vpop.f32.mrb[20].mxu1 }
 0x308   :  { %v617_v49 = vmax.f32 %v915_v48, 0.0  ;;  %v585_v50 = vpop.f32.mrb[21].mxu1 }
 0x309   :  { %v616_v51 = vmax.f32 %v585_v50, 0.0 }
 0x30a   :  { %633 = vst [vmem:[#allocation10 + $0x68] sm:$0xff] %v617_v49 }
 0x30b   :  { %632 = vst [vmem:[#allocation10 + $0x60] sm:$0xff] %v616_v51  ;;  %v918_v52 = vpop.f32.mrb[22].mxu1 }
 0x30c   :  { %v619_v53 = vmax.f32 %v918_v52, 0.0  ;;  %v595_v54 = vpop.f32.mrb[23].mxu1 }
 0x30d   :  { %v618_v55 = vmax.f32 %v595_v54, 0.0 }
 0x30e   :  { %635 = vst [vmem:[#allocation10 + $0x78] sm:$0xff] %v619_v53 }
 0x30f   :  { %634 = vst [vmem:[#allocation10 + $0x70] sm:$0xff] %v618_v55 }
 0x310   :  { %1137 = shalt.err (!%p1134_p8)
}
 0x311   :  { %s1138_s15 = scalar_lea.hbm %s1281_s4, 2048 }
 0x312   :  { %p1139_p9 = scmp.ne.s32.totalorder %s1281_s4, %s1138_s15  ;;  %p1142_p10 = scmp.lt.u32.totalorder %s1138_s15, %s1281_s4 }
 0x314   :  { %p1144_p11 = pnand %p1142_p10, %p1139_p9 }
 0x316   :  { %1147 = shalt.err (!%p1144_p11)
}
 0x317   :  { %647 = dma.vmem_to_hbm [thread:$0]  %s642_s12, 2048, %s1281_s4, [#allocation4], %s1158_s27, %s1158_s27, %s1159_s28  }
 0x318   :  { %1154 = dma.done.wait [#allocation4], 2048  }
 0x319   :  { %1155 = vsyncadd [#allocation4], 4294965248 }
 0x31a   :  { %651 = vsyncpa [#allocation3], 1 }
 0x31b   :  { %652 = vsyncpa [#allocation6], 1 }
 0x31c   :  { %653 = vsyncpa [#allocation9], 1 }
 0x31d   :  { %654 = vsyncpa [#allocation4], 1 }

</bundles_post_ra>
